<compile_context>
chip_gen: v7x
topology: tpu7x:2x2x1
jax: 0.10.0
libtpu: 0.0.40
codegen_flags: <defaults>
</compile_context>

<pallas_src>
import jax
import jax.numpy as jnp
from jax import lax
from jax.experimental import pallas as pl
from jax.experimental.pallas import tpu as pltpu


def _round_up(x, m):
    return (x + m - 1) // m * m


# ----------------------------------------------------------------------------
# Kernel 1: encode == linear projection + L2 row-normalize (query() / doc())
# ----------------------------------------------------------------------------
def _encode_kernel(h_ref, w_ref, out_ref):
    # h_ref:   (TM, H)  bf16   (token-)masked hidden rows for this row tile
    # w_ref:   (H, Dm)  bf16   pre-transposed linear weight, resident across grid
    # out_ref: (TM, Dm) bf16   L2-normalized projections
    x = jnp.dot(h_ref[...], w_ref[...], preferred_element_type=jnp.float32)  # MXU, f32 acc
    ssq = jnp.sum(x * x, axis=-1, keepdims=True)                              # (TM, 1) f32
    # F.normalize(x, p=2, dim=-1) == x / max(||x||, 1e-12) == x * rsqrt(max(||x||^2, 1e-24))
    inv = lax.rsqrt(jnp.maximum(ssq, 1e-24))                                  # EUP rsqrt
    out_ref[...] = (x * inv).astype(out_ref.dtype)


def colbert_encode(hidden, token_mask, w_t):
    """hidden: (B, L, H) f32; token_mask: (B, L) bool; w_t: (H, Dm) -> (B, L, Dm) bf16."""
    B, L, H = hidden.shape
    Dm = w_t.shape[1]
    R = B * L

    # MXU-shaped row tiles (multiples of 16 sublanes for the bf16 output tile);
    # keep >= 2 grid steps where possible so v7x can shard across its 2 TensorCores.
    if R >= 1024:
        TM = 256
    elif R >= 32:
        TM = 32
    else:
        TM = 16
    R_pad = _round_up(R, TM)

    # Fold the token mask into the rows (exact: bias-free Linear is row-wise linear),
    # flatten to 2D rows, pad, and cast the MXU inputs to bf16 (accumulation is f32).
    h2 = (hidden * token_mask[..., None].astype(hidden.dtype)).reshape(R, H)
    h2 = jnp.pad(h2, ((0, R_pad - R), (0, 0))).astype(jnp.bfloat16)
    wb = w_t.astype(jnp.bfloat16)

    out = pl.pallas_call(
        _encode_kernel,
        out_shape=jax.ShapeDtypeStruct((R_pad, Dm), jnp.bfloat16),
        grid=(R_pad // TM,),
        in_specs=[
            pl.BlockSpec((TM, H), lambda i: (i, 0)),
            pl.BlockSpec((H, Dm), lambda i: (0, 0)),   # weight stays resident in VMEM
        ],
        out_specs=pl.BlockSpec((TM, Dm), lambda i: (i, 0)),
        compiler_params=pltpu.CompilerParams(dimension_semantics=("parallel",)),
    )(h2, wb)
    return out[:R].reshape(B, L, Dm)


# ----------------------------------------------------------------------------
# Kernel 2: ColBERT MaxSim score (colbert_score + colbert_score_reduce, 'colbert')
#   grid over queries; each step scores one query against its nway docs
#   (replaces Q.repeat_interleave(nway) -- Q is fetched once per query, not per doc)
# ----------------------------------------------------------------------------
def _make_maxsim_kernel(nway):
    def kernel(q_ref, d_ref, m_ref, out_ref):
        # q_ref:   (1, Lq, Dm)        bf16   one query
        # d_ref:   (1, nway, Ld, Dm)  bf16   its nway docs
        # m_ref:   (1, nway, 1, Ld)   f32    doc token mask (1 keep / 0 pad), lane-dense
        # out_ref: (1, 1, nway)       f32    one score per doc
        q = q_ref[0]                                                   # (Lq, Dm)
        cols = []
        for w in range(nway):                                          # static unroll, nway small
            d = d_ref[0, w]                                            # (Ld, Dm)
            # S = Q . D^T, contracting the feature dim of both (no in-kernel transpose);
            # doc tokens end up on the lane axis -> lane-dense mask and lane-reduce max.
            s = lax.dot_general(q, d, (((1,), (1,)), ((), ())),
                                preferred_element_type=jnp.float32)    # (Lq, Ld) f32
            # scores_padded[D_padding] = -9999
            s = jnp.where(m_ref[0, w] > 0.0, s, -9999.0)               # (1, Ld) bcasts over rows
            cols.append(jnp.max(s, axis=-1, keepdims=True))            # max over doc tokens (Lq,1)
        pm = jnp.concatenate(cols, axis=-1)                            # (Lq, nway)
        out_ref[0] = jnp.sum(pm, axis=0, keepdims=True)                # sum over query tokens
    return kernel


def colbert_maxsim_score(Q, D, D_mask, nway):
    """Q: (Bq, Lq, Dm); D: (Bq*nway, Ld, Dm); D_mask: (Bq*nway, Ld) bool -> (Bq*nway,) f32."""
    Bq, Lq, Dm = Q.shape
    Bd, Ld, _ = D.shape
    assert Bd == Bq * nway, (Bd, Bq, nway)

    D4 = D.reshape(Bq, nway, Ld, Dm)
    m4 = D_mask.astype(jnp.float32).reshape(Bq, nway, 1, Ld)   # lane-dense doc mask

    out = pl.pallas_call(
        _make_maxsim_kernel(nway),
        out_shape=jax.ShapeDtypeStruct((Bq, 1, nway), jnp.float32),
        grid=(Bq,),
        in_specs=[
            pl.BlockSpec((1, Lq, Dm), lambda i: (i, 0, 0)),
            pl.BlockSpec((1, nway, Ld, Dm), lambda i: (i, 0, 0, 0)),
            pl.BlockSpec((1, nway, 1, Ld), lambda i: (i, 0, 0, 0)),
        ],
        out_specs=pl.BlockSpec((1, 1, nway), lambda i: (i, 0, 0)),
        compiler_params=pltpu.CompilerParams(dimension_semantics=("parallel",)),
    )(Q, D4, m4)
    return out.reshape(Bd)


# ----------------------------------------------------------------------------
# ColBERT module (forward semantics of the PyTorch ColBERT.forward)
# ----------------------------------------------------------------------------
class ColBERTPallas:
    def __init__(self, vocab_size=64, hidden=32, dim=32, nway=2,
                 skiplist_ids=(1, 2), key=None):
        if key is None:
            key = jax.random.PRNGKey(0)
        k_emb, k_lin = jax.random.split(key, 2)
        # deterministic synthetic parameters
        self.embedding = 0.02 * jax.random.normal(k_emb, (vocab_size, hidden), jnp.float32)
        # nn.Linear(hidden, dim, bias=False).weight is (dim, hidden); keep it
        # pre-transposed to (hidden, dim) so the kernel matmul needs no .T
        w = 0.02 * jax.random.normal(k_lin, (dim, hidden), jnp.float32)
        self.linear_w_t = w.T                      # (hidden, dim)
        self.nway = nway
        self.skiplist_ids = tuple(skiplist_ids)    # "punctuation" token ids

    def _encoder(self, input_ids, attention_mask):
        # TODO(synk): stands in for self.bert(input_ids, attention_mask)[0]
        del attention_mask
        return self.embedding[input_ids]           # (B, L, hidden)

    def _mask(self, input_ids, use_skiplist):
        m = input_ids != 0
        if use_skiplist:
            skip = jnp.zeros_like(m)
            for sid in self.skiplist_ids:
                skip = skip | (input_ids == sid)
            m = m & (~skip)
        return m                                   # bool (B, L)

    def query(self, input_ids, attention_mask):
        h = self._encoder(input_ids, attention_mask)
        mask = self._mask(input_ids, use_skiplist=False)        # skiplist=[]
        return colbert_encode(h, mask, self.linear_w_t)         # (Bq, Lq, Dm)

    def doc(self, input_ids, attention_mask):
        h = self._encoder(input_ids, attention_mask)
        mask = self._mask(input_ids, use_skiplist=True)         # mask_punctuation
        D = colbert_encode(h, mask, self.linear_w_t)            # (Bd, Ld, Dm)
        return D, mask                                          # keep_dims='return_mask'

    def forward(self, Q_inputs, D_inputs):
        Q = self.query(*Q_inputs)                               # (Bq, Lq, Dm)
        D, D_mask = self.doc(*D_inputs)                         # (Bd, Ld, Dm), (Bd, Ld)
        # no materialized Q.repeat_interleave(nway): the maxsim grid re-uses
        # each query block against its nway consecutive docs.
        return colbert_maxsim_score(Q, D, D_mask, self.nway)    # (Bd,)


# ----------------------------------------------------------------------------
if __name__ == "__main__":
    key = jax.random.PRNGKey(0)
    k_model, kq, kd = jax.random.split(key, 3)

    Bq, Lq = 2, 8           # queries
    nway = 2
    Bd, Ld = Bq * nway, 16  # docs (nway docs per query)
    hidden, dim, vocab = 32, 32, 64

    model = ColBERTPallas(vocab_size=vocab, hidden=hidden, dim=dim, nway=nway, key=k_model)

    # token ids in [0, vocab); 0 is padding, ids 1/2 play the role of punctuation
    q_ids = jax.random.randint(kq, (Bq, Lq), 0, vocab, dtype=jnp.int32)
    d_ids = jax.random.randint(kd, (Bd, Ld), 0, vocab, dtype=jnp.int32)
    # force a couple of padding positions so masking is exercised
    q_ids = q_ids.at[:, -1].set(0)
    d_ids = d_ids.at[:, -2:].set(0)
    q_attn = (q_ids != 0).astype(jnp.int32)
    d_attn = (d_ids != 0).astype(jnp.int32)

    scores = model.forward((q_ids, q_attn), (d_ids, d_attn))
    scores = jax.block_until_ready(scores)
    assert scores.shape == (Bd,) and scores.dtype == jnp.float32
    assert bool(jnp.all(jnp.isfinite(scores)))
    print("KERNEL_OK")
</pallas_src>

<mosaic_0001>
module attributes {stable_mosaic.version = 11 : i64} {
  func.func @_encode_kernel(%arg0: i32, %arg1: memref<16x32xbf16, #tpu.memory_space<vmem>>, %arg2: memref<32x32xbf16, #tpu.memory_space<vmem>>, %arg3: memref<16x32xbf16, #tpu.memory_space<vmem>>) attributes {dimension_semantics = [#tpu.dimension_semantics<parallel>], iteration_bounds = array<i64: 1>, scalar_prefetch = 0 : i64, scratch_operands = 0 : i64, tpu.core_type = #tpu.core_type<tc>, window_params = [{transform_indices = @transform_0, window_bounds = array<i64: 16, 32>}, {pipeline_mode = #tpu.pipeline_mode<synchronous>, transform_indices = @transform_1, window_bounds = array<i64: 32, 32>}, {transform_indices = @transform_2, window_bounds = array<i64: 16, 32>}]} {
    %c0 = arith.constant 0 : index
    %c0_0 = arith.constant 0 : index
    %0 = vector.load %arg1[%c0, %c0_0] : memref<16x32xbf16, #tpu.memory_space<vmem>>, vector<16x32xbf16>
    %c0_1 = arith.constant 0 : index
    %c0_2 = arith.constant 0 : index
    %1 = vector.load %arg2[%c0_1, %c0_2] : memref<32x32xbf16, #tpu.memory_space<vmem>>, vector<32x32xbf16>
    %cst = arith.constant dense<0.000000e+00> : vector<16x32xf32>
    %2 = tpu.matmul %0, %1, %cst {dimension_numbers = #tpu.dot_dimension_numbers<[1], [0], [0], [1], [0, 0, 1, 1], [], []>} : vector<16x32xbf16>, vector<32x32xbf16>, vector<16x32xf32> -> vector<16x32xf32>
    %3 = arith.mulf %2, %2 : vector<16x32xf32>
    %cst_3 = arith.constant dense<0.000000e+00> : vector<16xf32>
    %4 = vector.multi_reduction <add>, %3, %cst_3 [1] : vector<16x32xf32> to vector<16xf32>
    %5 = vector.shape_cast %4 : vector<16xf32> to vector<16x1xf32>
    %cst_4 = arith.constant 1.000000e-24 : f32
    %6 = vector.broadcast %cst_4 : f32 to vector<16x1xf32>
    %7 = arith.maximumf %5, %6 : vector<16x1xf32>
    %8 = math.rsqrt %7 : vector<16x1xf32>
    %9 = vector.broadcast %8 : vector<16x1xf32> to vector<16x32xf32>
    %10 = arith.mulf %2, %9 : vector<16x32xf32>
    %11 = arith.truncf %10 : vector<16x32xf32> to vector<16x32xbf16>
    %c0_5 = arith.constant 0 : index
    %c0_6 = arith.constant 0 : index
    %12 = vector.load %arg3[%c0_5, %c0_6] : memref<16x32xbf16, #tpu.memory_space<vmem>>, vector<16x32xbf16>
    tpu.vector_store %arg3[%c0_5, %c0_6], %11 {strides = array<i32>} : memref<16x32xbf16, #tpu.memory_space<vmem>>, vector<16x32xbf16>,
    return
  }
  func.func @transform_0(%arg0: i32) -> (i32, i32) {
    %c0_i32 = arith.constant 0 : i32
    %c0_i32_0 = arith.constant 0 : i32
    return %arg0, %c0_i32 : i32, i32
  }
  func.func @transform_1(%arg0: i32) -> (i32, i32) {
    %c0_i32 = arith.constant 0 : i32
    %c0_i32_0 = arith.constant 0 : i32
    %c0_i32_1 = arith.constant 0 : i32
    return %c0_i32, %c0_i32_0 : i32, i32
  }
  func.func @transform_2(%arg0: i32) -> (i32, i32) {
    %c0_i32 = arith.constant 0 : i32
    %c0_i32_0 = arith.constant 0 : i32
    return %arg0, %c0_i32 : i32, i32
  }
}

</mosaic_0001>

<bundles_post_ra>
// kernel: tpu_custom_call.1
= control target key start
LH: loop header
LB: loop body
LE: loop exit
PB: predicated region body
PF: predicated region fallthrough
CT: control target
= control target key end

     0   :  { %7 = vsyncpa [#allocation3], 0  ;;  %s324_s0 = inlined_call_operand.hbm [shape: bf16[16,32], index: 0, kind: input, shape index: {}]   ;;  %s325_s1 = inlined_call_operand.hbm [shape: bf16[32,32], index: 1, kind: input, shape index: {}]   ;;  %s326_s2 = inlined_call_operand.hbm [shape: bf16[16,32], index: 2, kind: output, shape index: {}]  }
   0x1   :  { %8 = vsyncpa [#allocation6], 0 }
   0x2   :  { %9 = vsyncpa [#allocation4], 0  ;;  %s257_s9 = smov [#allocation2]   ;;  %s185_s13 = scalar_lea.hbm %s324_s0, 128 }
   0x3   :  { %s15_s10 = sshll.u32 %s257_s9, 4  ;;  %p186_p0 = scmp.ne.s32.totalorder %s324_s0, %s185_s13  ;;  %s16_s10 = int_to_ptr.vmem [resolvable:$true] %s15_s10 }
   0x4   :  { %p189_p1 = scmp.lt.u32.totalorder %s185_s13, %s324_s0 }
   0x6   :  { %p191_p2 = pnand %p189_p1, %p186_p0 }
   0x8   :  { %194 = shalt.err (!%p191_p2)
}
   0x9   :  { %s195_s18 = scalar_lea.vmem %s16_s10, 128  ;;  %p200_p4 = scmp.lt.s32.totalorder %s16_s10, %s16_s10 }
   0xa   :  { %p196_p3 = scmp.ne.s32.totalorder %s16_s10, %s195_s18  ;;  %p201_p5 = scmp.lt.s32.totalorder %s195_s18, %s195_s18 }
   0xc   :  { %p202_p6 = por %p201_p5, %p200_p4 }
   0xe   :  { %p203_p7 = pnand %p202_p6, %p196_p3 }
  0x10   :  { %206 = shalt.err (!%p203_p7)
}
  0x11   :  { %s258_s19 = smov 64   ;;  %s259_s20 = smov 4  }
  0x12   :  { %21 = dma.hbm_to_vmem [thread:$0]  %s324_s0, 128, %s16_s10, [#allocation3], %s258_s19, %s258_s19, %s259_s20  }
  0x13   :  { %s260_s23 = smov [#allocation5]   ;;  %s207_s27 = scalar_lea.hbm %s325_s1, 256 }
  0x14   :  { %s27_s24 = sshll.u32 %s260_s23, 4  ;;  %p208_p8 = scmp.ne.s32.totalorder %s325_s1, %s207_s27  ;;  %s28_s24 = int_to_ptr.vmem [resolvable:$true] %s27_s24 }
  0x15   :  { %p211_p9 = scmp.lt.u32.totalorder %s207_s27, %s325_s1 }
  0x17   :  { %p213_p10 = pnand %p211_p9, %p208_p8 }
  0x19   :  { %216 = shalt.err (!%p213_p10)
}
  0x1a   :  { %s217_s4 = scalar_lea.vmem %s28_s24, 256  ;;  %p222_p12 = scmp.lt.s32.totalorder %s28_s24, %s28_s24 }
  0x1b   :  { %p218_p11 = scmp.ne.s32.totalorder %s28_s24, %s217_s4  ;;  %p223_p13 = scmp.lt.s32.totalorder %s217_s4, %s217_s4 }
  0x1d   :  { %p224_p0 = por %p223_p13, %p222_p12 }
  0x1f   :  { %p225_p1 = pnand %p224_p0, %p218_p11 }
  0x21   :  { %228 = shalt.err (!%p225_p1)
}
  0x22   :  { %33 = dma.hbm_to_vmem [thread:$0]  %s325_s1, 256, %s28_s24, [#allocation6], %s258_s19, %s258_s19, %s259_s20  }
  0x23   :  { %251 = dma.done.wait [#allocation3], 128  }
  0x24   :  { %252 = vsyncadd [#allocation3], 4294967168 }
  0x25   :  { %253 = dma.done.wait [#allocation6], 256  }
  0x26   :  { %254 = vsyncadd [#allocation6], 4294967040  ;;  %v261_v0 = vmov 0.0   ;;  %vm262_vm0 = vmmov 0   ;;  %v178_v1 = vld [vmem:[#allocation5] sm:$0xff]   ;;  %v179_v2 = vld [vmem:[#allocation5 + $0x8] sm:$0xff]  }
  0x27   :  { %163 = vmatprep.subr.bf16.mxu0 %v261_v0  ;;  %167 = vmatprep.mubr.msk.bf16.mxu0 %vm262_vm0, %v261_v0  ;;  %v180_v3 = vld [vmem:[#allocation2] sm:$0xff]   ;;  %vm64_vm1 = vcmask 261120   ;;  %vm131_vm2 = vcmask 257024   ;;  %s263_s1 = smov [#allocation7]  }
  0x28   :  { %164 = vmatpush3.bf16.msra.mxu0 %v178_v1  ;;  %s139_s6 = sshll.u32 %s263_s1, 4  ;;  %s140_s6 = int_to_ptr.vmem [resolvable:$true] %s139_s6 }
  0x29   :  { %165 = vmatprep.subr.bf16.mxu0 %v261_v0  ;;  %s229_s7 = scalar_lea.vmem %s140_s6, 128  ;;  %p234_p3 = scmp.lt.s32.totalorder %s140_s6, %s140_s6 }
  0x2a   :  { %p230_p2 = scmp.ne.s32.totalorder %s140_s6, %s229_s7  ;;  %p235_p4 = scmp.lt.s32.totalorder %s229_s7, %s229_s7 }
  0x2c   :  { %166 = vmatpush3.bf16.msra.mxu0 %v179_v2  ;;  %p236_p5 = por %p235_p4, %p234_p3 }
  0x2e   :  { %p237_p6 = pnand %p236_p5, %p230_p2 }
  0x2f   :  { %168 = vmatmul.mubr.msk.bf16.vlgmr.msra.gmra.mrb[0].mxu0 %vm64_vm1, %v180_v3 }
 0x102   :  { %v102_v4 = vpop.f32.mrb[0].mxu0 }
 0x103   :  { %v169_v5 = vpop.f32.mrb[1].mxu0  ;;  %v109_v6 = vmul.f32 %v102_v4, %v102_v4 }
 0x104   :  { %v105_v7 = vpop.f32.mrb[2].mxu0 }
 0x105   :  { %v110_v8 = vmul.f32 %v105_v7, %v105_v7  ;;  %v170_v9 = vpop.f32.mrb[3].mxu0  ;;  %v111_v10 = vsel %vm64_vm1, %v109_v6, 0.0 }
 0x106   :  { %112 = vadd.xlane.f32.xlu0 %v111_v10 }
 0x107   :  { %v114_v11 = vsel %vm64_vm1, %v110_v8, 0.0 }
 0x10a   :  { %115 = vadd.xlane.f32.xlu0 %v114_v11 }
 0x193   :  { %v113_v12 = vpop.xlane.xlu0 %112 }
 0x194   :  { %v117_v13 = vmax.f32 %v113_v12, 1e-24 }
 0x196   :  { %181 = vrsqrt.f32 %v117_v13 }
 0x197   :  { %v116_v14 = vpop.xlane.xlu0 %115 }
 0x198   :  { %v118_v15 = vmax.f32 %v116_v14, 1e-24 }
 0x19a   :  { %183 = vrsqrt.f32 %v118_v15 }
 0x1a0   :  { %v182_v16 = vpop.eup %181 }
 0x1a1   :  { %v121_v17 = vmul.f32 %v182_v16, %v102_v4 }
 0x1a3   :  { %v158_v18 = vpack.c.bf16 %v121_v17, %v121_v17 }
 0x1a4   :  { %v184_v19 = vpop.eup %183 }
 0x1a5   :  { %v122_v20 = vmul.f32 %v184_v19, %v105_v7  ;;  %132 = vst.msk [vmem:[#allocation7] sm:$0xf] %vm131_vm2, %v158_v18 }
 0x1a7   :  { %v159_v21 = vpack.c.bf16 %v122_v20, %v122_v20 }
 0x1a9   :  { %133 = vst.msk [vmem:[#allocation7 + $0x4] sm:$0xf] %vm131_vm2, %v159_v21 }
 0x1aa   :  { %240 = shalt.err (!%p237_p6)
}
 0x1ab   :  { %s241_s10 = scalar_lea.hbm %s326_s2, 128 }
 0x1ac   :  { %p242_p7 = scmp.ne.s32.totalorder %s326_s2, %s241_s10  ;;  %p245_p8 = scmp.lt.u32.totalorder %s241_s10, %s326_s2 }
 0x1ae   :  { %p247_p9 = pnand %p245_p8, %p242_p7 }
 0x1b0   :  { %250 = shalt.err (!%p247_p9)
}
 0x1b1   :  { %145 = dma.vmem_to_hbm [thread:$0]  %s140_s6, 128, %s326_s2, [#allocation4], %s258_s19, %s258_s19, %s259_s20  }
 0x1b2   :  { %255 = dma.done.wait [#allocation4], 128  }
 0x1b3   :  { %256 = vsyncadd [#allocation4], 4294967168 }
 0x1b4   :  { %149 = vsyncpa [#allocation3], 1 }
 0x1b5   :  { %150 = vsyncpa [#allocation6], 1 }
 0x1b6   :  { %151 = vsyncpa [#allocation4], 1 }

</bundles_post_ra>
